<compile_context>
chip_gen: v7x
topology: tpu7x:2x2x1
jax: 0.10.0
libtpu: 0.0.40
codegen_flags: <defaults>
</compile_context>

<pallas_src>
import functools
import math

import jax
import jax.numpy as jnp
from jax import lax
from jax.experimental import pallas as pl
from jax.experimental.pallas import tpu as pltpu


# --------------------------------------------------------------------------
# K/V projection kernel (run once per batch; outputs bf16)
# --------------------------------------------------------------------------
def kv_proj_kernel(k_ref, v_ref, wk_ref, wv_ref, kout_ref, vout_ref):
    kout_ref[0] = jnp.dot(k_ref[0], wk_ref[...],
                          preferred_element_type=jnp.float32
                          ).astype(kout_ref.dtype)
    vout_ref[0] = jnp.dot(v_ref[0], wv_ref[...],
                          preferred_element_type=jnp.float32
                          ).astype(vout_ref.dtype)


# --------------------------------------------------------------------------
# Main attention kernel: one (batch, q-tile) block per grid step
# --------------------------------------------------------------------------
def mha_attn_kernel(q_ref, kp_ref, vp_ref, wq_ref, wfc_ref,
                    gamma_ref, beta_ref,
                    out_ref, attn_ref,
                    o_heads,                      # VMEM scratch (tq, H*d_v) bf16
                    *, n_head, d_k, d_v, eps):
    cd = jnp.bfloat16

    xq = q_ref[0]                                 # (tq, dm) f32 -- residual too

    # Q projection (wq pre-scaled by 1/sqrt(d_k) in the wrapper); cast straight
    # to bf16 -- no separate f32 copy kept live.
    Qb = jnp.dot(xq.astype(cd), wq_ref[...],
                 preferred_element_type=jnp.float32).astype(cd)   # (tq, H*d_k)
    Kb = kp_ref[0]                                # (Lk, H*d_k) bf16 (pre-projected)
    Vb = vp_ref[0]                                # (Lk, H*d_v) bf16 (pre-projected)

    # Per-head attention. Static unroll (n_head is small here).
    # TODO(synk): for n_head >= 8 switch to lax.fori_loop with pl.ds slices to
    # bound per-head live ranges.
    for h in range(n_head):
        qh = Qb[:, h * d_k:(h + 1) * d_k]                     # (tq, d_k)
        kh = Kb[:, h * d_k:(h + 1) * d_k]                     # (Lk, d_k)
        vh = Vb[:, h * d_v:(h + 1) * d_v]                     # (Lk, d_v)

        # scores = (qh * 1/sqrt(d_k)) @ kh.T   (scale already folded into wq)
        scores = lax.dot_general(
            qh, kh, (((1,), (1,)), ((), ())),
            preferred_element_type=jnp.float32)               # (tq, Lk)

        m = jnp.max(scores, axis=-1, keepdims=True)
        e = jnp.exp(scores - m)
        s = jnp.sum(e, axis=-1, keepdims=True)
        attn = e * (1.0 / s)                  # exact reciprocal ((tq,1) -> cheap)

        # Stored attention probabilities are bf16 (deliberate precision choice
        # to halve the dominant HBM write stream); math above is f32.
        attn_ref[0, h] = attn.astype(attn_ref.dtype)          # (tq, Lk)

        # TODO(synk): attention-dropout is identity (eval mode); mask=None only.
        oh = jnp.dot(attn.astype(cd), vh,
                     preferred_element_type=jnp.float32)      # (tq, d_v)
        o_heads[:, h * d_v:(h + 1) * d_v] = oh.astype(cd)

    # One fused fc matmul over the full H*d_v contraction.
    acc = jnp.dot(o_heads[...], wfc_ref[...],
                  preferred_element_type=jnp.float32)         # (tq, dm)

    # TODO(synk): fc-dropout is identity (eval mode).
    y = acc + xq                                              # residual add (f32)

    # LayerNorm over last dim, eps inside the sqrt (as nn.LayerNorm).
    mean = jnp.mean(y, axis=-1, keepdims=True)
    var = jnp.mean((y - mean) ** 2, axis=-1, keepdims=True)
    normed = (y - mean) * lax.rsqrt(var + eps)
    out_ref[0] = (normed * gamma_ref[...] + beta_ref[...]).astype(out_ref.dtype)


# --------------------------------------------------------------------------
# VMEM sizing helpers (per-generation derivation instead of fixed constants)
# --------------------------------------------------------------------------
def _vmem_capacity_bytes():
    try:
        cap = getattr(pltpu.get_tpu_info(), "vmem_capacity_bytes", None)
        if cap:
            return int(cap)
    except Exception:
        pass
    return 64 * 1024 * 1024   # conservative fallback (v7x per-core)


def _estimate_attn_vmem(q_tile, Lk, d_model, n_head, d_k, d_v):
    qdk, qdv = n_head * d_k, n_head * d_v
    b = 0
    b += 2 * q_tile * d_model * 4            # q block (f32), double-buffered
    b += 2 * Lk * qdk * 2                    # K_proj block (bf16)
    b += 2 * Lk * qdv * 2                    # V_proj block (bf16)
    b += 2 * d_model * qdk * 2               # wq (bf16)
    b += 2 * qdv * d_model * 2               # wfc (bf16)
    b += 2 * q_tile * d_model * 4            # out block (f32)
    b += 2 * n_head * q_tile * Lk * 2        # attn out block (bf16)
    b += q_tile * qdv * 2                    # o_heads scratch (bf16)
    b += 3 * q_tile * Lk * 4                 # live f32 score/exp temporaries
    b += q_tile * (qdk + d_model) * 4        # misc f32 temporaries
    return b


def _estimate_proj_vmem(k_tile, d_model, n_head, d_k, d_v):
    qdk, qdv = n_head * d_k, n_head * d_v
    b = 2 * k_tile * d_model * 2 * 2                 # k, v blocks (bf16)
    b += 2 * (d_model * qdk + d_model * qdv) * 2     # wk, wv (bf16)
    b += 2 * (k_tile * qdk + k_tile * qdv) * 2       # outputs (bf16)
    b += k_tile * max(qdk, qdv) * 4                  # f32 matmul temp
    return b


def _pick_q_tile(Lq, Lk, d_model, n_head, d_k, d_v, budget):
    """Biggest lane-friendly q-tile whose VMEM estimate fits the budget."""
    if Lq <= 256:
        return Lq
    for cand in (1024, 512, 256, 128):
        if cand <= Lq and _estimate_attn_vmem(
                cand, Lk, d_model, n_head, d_k, d_v) <= budget:
            return cand
    return 128


def _pick_k_tile(Lk, d_model, n_head, d_k, d_v, budget):
    """k-tile must divide Lk exactly (no padding on the key axis)."""
    for cand in (1024, 512, 256, 128):
        if Lk % cand == 0 and _estimate_proj_vmem(
                cand, d_model, n_head, d_k, d_v) <= budget:
            return cand
    return Lk


def _vmem_limit(estimate, capacity):
    return int(min(max(estimate * 1.3, 32 * 1024 * 1024), capacity * 0.9))


# --------------------------------------------------------------------------
# Wrapper
# --------------------------------------------------------------------------
def multi_head_attention(q, k, v, wq, wk, wv, wfc, gamma, beta,
                         *, n_head, d_k, d_v, q_tile=None):
    B, Lq, d_model = q.shape
    Lk = k.shape[1]
    Lv = v.shape[1]
    assert Lv == Lk, "len_v must equal len_k"
    assert k.shape[2] == d_model and v.shape[2] == d_model

    bf = jnp.bfloat16
    capacity = _vmem_capacity_bytes()
    budget = int(capacity * 0.75)

    # bf16 weights (wq pre-scaled by 1/sqrt(d_k): softmax(QK^T/sqrt(dk)) ==
    # softmax((X (wq*s)) K^T)); f32 accumulation happens in-kernel.
    inv_temp = 1.0 / (d_k ** 0.5)
    wq_b = (wq * inv_temp).astype(bf)
    wk_b = wk.astype(bf)
    wv_b = wv.astype(bf)
    wfc_b = wfc.astype(bf)
    k_b = k.astype(bf)
    v_b = v.astype(bf)

    # ------------------------------------------------------------------
    # Stage 1: project K and V once per batch (bf16 outputs).
    # ------------------------------------------------------------------
    k_tile = _pick_k_tile(Lk, d_model, n_head, d_k, d_v, budget)
    n_kt = Lk // k_tile
    proj_limit = _vmem_limit(
        _estimate_proj_vmem(k_tile, d_model, n_head, d_k, d_v), capacity)

    kp, vp = pl.pallas_call(
        kv_proj_kernel,
        out_shape=(jax.ShapeDtypeStruct((B, Lk, n_head * d_k), bf),
                   jax.ShapeDtypeStruct((B, Lk, n_head * d_v), bf)),
        grid_spec=pltpu.PrefetchScalarGridSpec(
            num_scalar_prefetch=0,
            grid=(B, n_kt),
            in_specs=[
                pl.BlockSpec((1, k_tile, d_model), lambda b, i: (b, i, 0)),
                pl.BlockSpec((1, k_tile, d_model), lambda b, i: (b, i, 0)),
                pl.BlockSpec((d_model, n_head * d_k), lambda b, i: (0, 0)),
                pl.BlockSpec((d_model, n_head * d_v), lambda b, i: (0, 0)),
            ],
            out_specs=[
                pl.BlockSpec((1, k_tile, n_head * d_k), lambda b, i: (b, i, 0)),
                pl.BlockSpec((1, k_tile, n_head * d_v), lambda b, i: (b, i, 0)),
            ],
        ),
        compiler_params=pltpu.CompilerParams(
            dimension_semantics=("parallel", "parallel"),
            vmem_limit_bytes=proj_limit),
    )(k_b, v_b, wk_b, wv_b)

    # ------------------------------------------------------------------
    # Stage 2: attention + fc + residual + LayerNorm, tiled over (B, q-tiles).
    # ------------------------------------------------------------------
    if q_tile is None:
        q_tile = _pick_q_tile(Lq, Lk, d_model, n_head, d_k, d_v, budget)
    # Pad the query axis if the tile does not divide Lq (padded rows are
    # discarded; softmax is per-row so they never touch real rows).
    Lq_pad = ((Lq + q_tile - 1) // q_tile) * q_tile
    q_in = q if Lq_pad == Lq else jnp.pad(q, ((0, 0), (0, Lq_pad - Lq), (0, 0)))
    n_qt = Lq_pad // q_tile

    attn_limit = _vmem_limit(
        _estimate_attn_vmem(q_tile, Lk, d_model, n_head, d_k, d_v), capacity)

    kernel = functools.partial(mha_attn_kernel, n_head=n_head, d_k=d_k,
                               d_v=d_v, eps=1e-6)

    grid_spec = pltpu.PrefetchScalarGridSpec(
        num_scalar_prefetch=0,
        grid=(B, n_qt),
        in_specs=[
            pl.BlockSpec((1, q_tile, d_model), lambda b, i: (b, i, 0)),
            pl.BlockSpec((1, Lk, n_head * d_k), lambda b, i: (b, 0, 0)),
            pl.BlockSpec((1, Lk, n_head * d_v), lambda b, i: (b, 0, 0)),
            pl.BlockSpec((d_model, n_head * d_k), lambda b, i: (0, 0)),
            pl.BlockSpec((n_head * d_v, d_model), lambda b, i: (0, 0)),
            pl.BlockSpec((1, d_model), lambda b, i: (0, 0)),
            pl.BlockSpec((1, d_model), lambda b, i: (0, 0)),
        ],
        out_specs=[
            pl.BlockSpec((1, q_tile, d_model), lambda b, i: (b, i, 0)),
            pl.BlockSpec((1, n_head, q_tile, Lk), lambda b, i: (b, 0, i, 0)),
        ],
        scratch_shapes=[pltpu.VMEM((q_tile, n_head * d_v), bf)],
    )

    out_shape = (
        jax.ShapeDtypeStruct((B, Lq_pad, d_model), jnp.float32),
        jax.ShapeDtypeStruct((B, n_head, Lq_pad, Lk), bf),
    )

    out, attn = pl.pallas_call(
        kernel,
        out_shape=out_shape,
        grid_spec=grid_spec,
        compiler_params=pltpu.CompilerParams(
            dimension_semantics=("parallel", "parallel"),
            vmem_limit_bytes=attn_limit),
    )(q_in, kp, vp, wq_b, wfc_b, gamma, beta)

    if Lq_pad != Lq:
        out = out[:, :Lq]
        attn = attn[:, :, :Lq]
    return out, attn


# --------------------------------------------------------------------------
# Pure-JAX f32 reference mirroring the PyTorch forward (eval, no mask)
# --------------------------------------------------------------------------
def reference(q, k, v, wq, wk, wv, wfc, gamma, beta, *, n_head, d_k, d_v):
    B, Lq, dm = q.shape
    Lk = k.shape[1]
    residual = q
    Q = (q @ wq).reshape(B, Lq, n_head, d_k).transpose(0, 2, 1, 3)
    K = (k @ wk).reshape(B, Lk, n_head, d_k).transpose(0, 2, 1, 3)
    V = (v @ wv).reshape(B, Lk, n_head, d_v).transpose(0, 2, 1, 3)
    scores = jnp.einsum("bhqd,bhkd->bhqk", Q, K) / (d_k ** 0.5)
    attn = jax.nn.softmax(scores, axis=-1)
    o = jnp.einsum("bhqk,bhkd->bhqd", attn, V)
    o = o.transpose(0, 2, 1, 3).reshape(B, Lq, n_head * d_v)
    o = o @ wfc + residual
    mean = jnp.mean(o, axis=-1, keepdims=True)
    var = jnp.mean((o - mean) ** 2, axis=-1, keepdims=True)
    o = (o - mean) / jnp.sqrt(var + 1e-6) * gamma[0] + beta[0]
    return o, attn


if __name__ == "__main__":
    # Small deterministic configuration.
    B, L, d_model = 2, 8, 32
    n_head, d_k, d_v = 4, 8, 8

    key = jax.random.PRNGKey(0)
    kq, kk, kv, kwq, kwk, kwv, kwf = jax.random.split(key, 7)

    q = jax.random.normal(kq, (B, L, d_model), dtype=jnp.float32)
    k = jax.random.normal(kk, (B, L, d_model), dtype=jnp.float32)
    v = jax.random.normal(kv, (B, L, d_model), dtype=jnp.float32)

    scale = 1.0 / math.sqrt(d_model)
    wq = jax.random.normal(kwq, (d_model, n_head * d_k), jnp.float32) * scale
    wk = jax.random.normal(kwk, (d_model, n_head * d_k), jnp.float32) * scale
    wv = jax.random.normal(kwv, (d_model, n_head * d_v), jnp.float32) * scale
    wfc = jax.random.normal(kwf, (n_head * d_v, d_model), jnp.float32) * scale
    gamma = jnp.ones((1, d_model), jnp.float32)   # LayerNorm weight
    beta = jnp.zeros((1, d_model), jnp.float32)   # LayerNorm bias

    out, attn = multi_head_attention(
        q, k, v, wq, wk, wv, wfc, gamma, beta,
        n_head=n_head, d_k=d_k, d_v=d_v)
    jax.block_until_ready((out, attn))

    out_ref, attn_ref = reference(
        q, k, v, wq, wk, wv, wfc, gamma, beta,
        n_head=n_head, d_k=d_k, d_v=d_v)

    # Tolerances account for bf16 MXU operands and the bf16 attention output
    # (kernel math is f32; reference is pure f32). Structural bugs would give
    # O(1) errors.
    assert jnp.allclose(attn.astype(jnp.float32), attn_ref, atol=3e-2), \
        "attn mismatch"
    assert jnp.allclose(out, out_ref, atol=1e-1), "output mismatch"

    print("KERNEL_OK")
</pallas_src>

<mosaic_0001>
module attributes {stable_mosaic.version = 11 : i64} {
  func.func @kv_proj_kernel(%arg0: i32, %arg1: i32, %arg2: memref<1x8x32xbf16, #tpu.memory_space<vmem>>, %arg3: memref<1x8x32xbf16, #tpu.memory_space<vmem>>, %arg4: memref<32x32xbf16, #tpu.memory_space<vmem>>, %arg5: memref<32x32xbf16, #tpu.memory_space<vmem>>, %arg6: memref<1x8x32xbf16, #tpu.memory_space<vmem>>, %arg7: memref<1x8x32xbf16, #tpu.memory_space<vmem>>) attributes {dimension_semantics = [#tpu.dimension_semantics<parallel>, #tpu.dimension_semantics<parallel>], iteration_bounds = array<i64: 2, 1>, scalar_prefetch = 0 : i64, scratch_operands = 0 : i64, tpu.core_type = #tpu.core_type<tc>, window_params = [{transform_indices = @transform_0, window_bounds = array<i64: 1, 8, 32>}, {transform_indices = @transform_1, window_bounds = array<i64: 1, 8, 32>}, {pipeline_mode = #tpu.pipeline_mode<synchronous>, transform_indices = @transform_2, window_bounds = array<i64: 32, 32>}, {pipeline_mode = #tpu.pipeline_mode<synchronous>, transform_indices = @transform_3, window_bounds = array<i64: 32, 32>}, {transform_indices = @transform_4, window_bounds = array<i64: 1, 8, 32>}, {transform_indices = @transform_5, window_bounds = array<i64: 1, 8, 32>}]} {
    %c0 = arith.constant 0 : index
    %c0_0 = arith.constant 0 : index
    %c0_1 = arith.constant 0 : index
    %0 = vector.load %arg2[%c0, %c0_0, %c0_1] : memref<1x8x32xbf16, #tpu.memory_space<vmem>>, vector<1x8x32xbf16>
    %1 = vector.shape_cast %0 : vector<1x8x32xbf16> to vector<8x32xbf16>
    %c0_2 = arith.constant 0 : index
    %c0_3 = arith.constant 0 : index
    %2 = vector.load %arg4[%c0_2, %c0_3] : memref<32x32xbf16, #tpu.memory_space<vmem>>, vector<32x32xbf16>
    %cst = arith.constant dense<0.000000e+00> : vector<8x32xf32>
    %3 = tpu.matmul %1, %2, %cst {dimension_numbers = #tpu.dot_dimension_numbers<[1], [0], [0], [1], [0, 0, 1, 1], [], []>} : vector<8x32xbf16>, vector<32x32xbf16>, vector<8x32xf32> -> vector<8x32xf32>
    %4 = arith.truncf %3 : vector<8x32xf32> to vector<8x32xbf16>
    %c0_4 = arith.constant 0 : index
    %c0_5 = arith.constant 0 : index
    %c0_6 = arith.constant 0 : index
    %5 = vector.load %arg6[%c0_4, %c0_5, %c0_6] : memref<1x8x32xbf16, #tpu.memory_space<vmem>>, vector<1x8x32xbf16>
    %6 = vector.shape_cast %5 : vector<1x8x32xbf16> to vector<8x32xbf16>
    %7 = vector.shape_cast %4 : vector<8x32xbf16> to vector<1x8x32xbf16>
    tpu.vector_store %arg6[%c0_4, %c0_5, %c0_6], %7 {strides = array<i32>} : memref<1x8x32xbf16, #tpu.memory_space<vmem>>, vector<1x8x32xbf16>,
    %c0_7 = arith.constant 0 : index
    %c0_8 = arith.constant 0 : index
    %c0_9 = arith.constant 0 : index
    %8 = vector.load %arg3[%c0_7, %c0_8, %c0_9] : memref<1x8x32xbf16, #tpu.memory_space<vmem>>, vector<1x8x32xbf16>
    %9 = vector.shape_cast %8 : vector<1x8x32xbf16> to vector<8x32xbf16>
    %c0_10 = arith.constant 0 : index
    %c0_11 = arith.constant 0 : index
    %10 = vector.load %arg5[%c0_10, %c0_11] : memref<32x32xbf16, #tpu.memory_space<vmem>>, vector<32x32xbf16>
    %cst_12 = arith.constant dense<0.000000e+00> : vector<8x32xf32>
    %11 = tpu.matmul %9, %10, %cst_12 {dimension_numbers = #tpu.dot_dimension_numbers<[1], [0], [0], [1], [0, 0, 1, 1], [], []>} : vector<8x32xbf16>, vector<32x32xbf16>, vector<8x32xf32> -> vector<8x32xf32>
    %12 = arith.truncf %11 : vector<8x32xf32> to vector<8x32xbf16>
    %c0_13 = arith.constant 0 : index
    %c0_14 = arith.constant 0 : index
    %c0_15 = arith.constant 0 : index
    %13 = vector.load %arg7[%c0_13, %c0_14, %c0_15] : memref<1x8x32xbf16, #tpu.memory_space<vmem>>, vector<1x8x32xbf16>
    %14 = vector.shape_cast %13 : vector<1x8x32xbf16> to vector<8x32xbf16>
    %15 = vector.shape_cast %12 : vector<8x32xbf16> to vector<1x8x32xbf16>
    tpu.vector_store %arg7[%c0_13, %c0_14, %c0_15], %15 {strides = array<i32>} : memref<1x8x32xbf16, #tpu.memory_space<vmem>>, vector<1x8x32xbf16>,
    return
  }
  func.func @transform_0(%arg0: i32, %arg1: i32) -> (i32, i32, i32) {
    %c0_i32 = arith.constant 0 : i32
    %c0_i32_0 = arith.constant 0 : i32
    return %arg0, %arg1, %c0_i32 : i32, i32, i32
  }
  func.func @transform_1(%arg0: i32, %arg1: i32) -> (i32, i32, i32) {
    %c0_i32 = arith.constant 0 : i32
    %c0_i32_0 = arith.constant 0 : i32
    return %arg0, %arg1, %c0_i32 : i32, i32, i32
  }
  func.func @transform_2(%arg0: i32, %arg1: i32) -> (i32, i32) {
    %c0_i32 = arith.constant 0 : i32
    %c0_i32_0 = arith.constant 0 : i32
    %c0_i32_1 = arith.constant 0 : i32
    return %c0_i32, %c0_i32_0 : i32, i32
  }
  func.func @transform_3(%arg0: i32, %arg1: i32) -> (i32, i32) {
    %c0_i32 = arith.constant 0 : i32
    %c0_i32_0 = arith.constant 0 : i32
    %c0_i32_1 = arith.constant 0 : i32
    return %c0_i32, %c0_i32_0 : i32, i32
  }
  func.func @transform_4(%arg0: i32, %arg1: i32) -> (i32, i32, i32) {
    %c0_i32 = arith.constant 0 : i32
    %c0_i32_0 = arith.constant 0 : i32
    return %arg0, %arg1, %c0_i32 : i32, i32, i32
  }
  func.func @transform_5(%arg0: i32, %arg1: i32) -> (i32, i32, i32) {
    %c0_i32 = arith.constant 0 : i32
    %c0_i32_0 = arith.constant 0 : i32
    return %arg0, %arg1, %c0_i32 : i32, i32, i32
  }
}

</mosaic_0001>

<bundles_post_ra>
// kernel: tpu_custom_call.1
= control target key start
LH: loop header
LB: loop body
LE: loop exit
PB: predicated region body
PF: predicated region fallthrough
CT: control target
= control target key end

     0   :  { %s1417_s0 = inlined_call_operand.hbm [shape: bf16[2,8,32], index: 0, kind: input, shape index: {}]   ;;  %s1418_s1 = inlined_call_operand.hbm [shape: bf16[2,8,32], index: 1, kind: input, shape index: {}]   ;;  %s1419_s2 = inlined_call_operand.hbm [shape: bf16[32,32], index: 2, kind: input, shape index: {}]   ;;  %s1420_s3 = inlined_call_operand.hbm [shape: bf16[32,32], index: 3, kind: input, shape index: {}]   ;;  %s1421_s4 = inlined_call_operand.hbm [shape: bf16[2,8,32], index: 4, kind: output, shape index: {0}]   ;;  %s1422_s5 = inlined_call_operand.hbm [shape: bf16[2,8,32], index: 5, kind: output, shape index: {1}]  }
   0x1   :  { %1429 = sst [smem:[#allocation21_spill]] %s1419_s2 }
   0x2   :  { %1430 = sst [smem:[#allocation22_spill]] %s1420_s3 }
   0x3   :  { %11 = vsyncpa [#allocation3], 0 }
   0x4   :  { %13 = vsyncpa [#allocation3 + $0x1], 0 }
   0x5   :  { %14 = vsyncpa [#allocation6], 0 }
   0x6   :  { %16 = vsyncpa [#allocation6 + $0x1], 0 }
   0x7   :  { %17 = vsyncpa [#allocation9], 0 }
   0x8   :  { %18 = vsyncpa [#allocation4], 0 }
   0x9   :  { %20 = vsyncpa [#allocation4 + $0x1], 0 }
   0xa   :  { %21 = vsyncpa [#allocation12], 0 }
   0xb   :  { %23 = vsyncpa [#allocation12 + $0x1], 0  ;;  %s1092_s18 = smov 0   ;;  %s1094_s19 = smov 0  }
   0xc   :  { %s1096_s20 = smov 0   ;;  %s1098_s21 = smov 0  }
   0xd   :  { %s1100_s22 = smov 0   ;;  %s1102_s23 = smov 0  }
   0xe LB: > { %1431 = sst [smem:[#allocation19_spill]] %s1046_s22  ;;  %s1123_s24 = sadd.s32 4294967295, %s1050_s23   ;;  %s1050_s23 = sphi %s1102_s23, %s29_s23   ;;  %s1046_s22 = sphi %s1100_s22, %s1452_s22   ;;  %s1042_s21 = sphi %s1098_s21, %s1451_s21   ;;  %s1038_s20 = sphi %s1096_s20, %s1455_s20   ;;  %s1034_s19 = sphi %s1094_s19, %s1454_s19   ;;  %s1030_s18 = sphi %s1092_s18, %s1453_s18  }
   0xf   : > { %s657_s25 = sadd.s32 4294967294, %s1050_s23   ;;  %p63_p0 = scmp.ne.s32.totalorder %s1034_s19, %s1030_s18 }
  0x10   : > { %p1423_p1 = scmp.eq.s32.totalorder %s1123_s24, 0  ;;  %p165_p3 = scmp.eq.s32.totalorder %s657_s25, 1 }
  0x11   : > { %p658_p5 = scmp.ge.s32.totalorder %s1050_s23, 1  ;;  %p200_p7 = scmp.lt.s32.totalorder %s1050_s23, 3 }
  0x12   : > { %p1132_p4 = por %p1423_p1, %p63_p0  ;;  %p1137_p6 = por %p165_p3, %p63_p0 }
  0x13   : > { %p1142_p8 = pnand %p658_p5, %p200_p7  ;;  %s1052_s29 = smov [#allocation7]  }
  0x14   : > { %s1432_s26 = scalar_select %p1132_p4, 1, 0 }
  0x15   : > { %s1433_s27 = scalar_select %p1137_p6, 1, 0 }
  0x16   : > { %s1434_s28 = scalar_select %p1142_p8, 1, 0 }
  0x17   : > { %s212_s30 = sshll.u32 %s1052_s29, 4  ;;  %p723_p9 = pneg %p1142_p8  ;;  %s1146_s30 = int_to_ptr.vmem [resolvable:$true] %s212_s30 }
  0x18   : > { %s1053_s7 = smov [#allocation8]   ;;  %s1436_s2 = sld [smem:[#allocation21_spill]] }
  0x19   : > { %p1153_p11 = pnand %p723_p9, %p1423_p1  ;;  %s225_s8 = sshll.u32 %s1053_s7, 4  ;;  %s1157_s8 = int_to_ptr.vmem [resolvable:$true] %s225_s8 }
  0x1b   : > { %p810_p13 = pneg %p1153_p11 }
  0x1e   : > { %s808_s11 = scalar_lea.hbm %s1436_s2, 256 }
  0x1f   : > { %p809_p12 = scmp.ne.s32.totalorder %s1436_s2, %s808_s11  ;;  %p815_p5 = scmp.lt.u32.totalorder %s808_s11, %s1436_s2 }
  0x21   : > { %p811_p0 = pnand %p810_p13, %p809_p12 }
  0x23   : > { %p812_p3 = pneg %p811_p0 }
  0x25   : > { %p817_p7 = pnand %p815_p5, %p812_p3 }
  0x27   : > { %820 = shalt.err (!%p817_p7)
}
  0x28   : > { %s821_s16 = scalar_lea.vmem %s1146_s30, 256  ;;  %p829_p2 = scmp.lt.s32.totalorder %s1146_s30, %s1146_s30 }
  0x29   : > { %p822_p9 = scmp.ne.s32.totalorder %s1146_s30, %s821_s16  ;;  %p830_p12 = scmp.lt.s32.totalorder %s821_s16, %s821_s16 }
  0x2b   : > { %p824_p10 = pnand %p822_p9, %p810_p13  ;;  %p831_p0 = por %p830_p12, %p829_p2 }
  0x2d   : > { %p825_p1 = pneg %p824_p10 }
  0x2f   : > { %p832_p6 = pnand %p831_p0, %p825_p1 }
  0x31   : > { %835 = shalt.err (!%p832_p6)
}
  0x32   : > { %s1054_s17 = smov 64   ;;  %s1055_s25 = smov 4  }
  0x33   : > { %726 = dma.hbm_to_vmem [thread:$0]  (!%p1153_p11), %s1436_s2, 256, %s1146_s30, [#allocation6], %s1054_s17, %s1054_s17, %s1055_s25  }
  0x34   : > { %s1437_s3 = sld [smem:[#allocation22_spill]] }
  0x3a   : > { %s836_s11 = scalar_lea.hbm %s1437_s3, 256 }
  0x3b   : > { %p837_p2 = scmp.ne.s32.totalorder %s1437_s3, %s836_s11  ;;  %p843_p10 = scmp.lt.u32.totalorder %s836_s11, %s1437_s3 }
  0x3d   : > { %p839_p1 = pnand %p837_p2, %p810_p13 }
  0x3f   : > { %p840_p6 = pneg %p839_p1 }
  0x41   : > { %p845_p3 = pnand %p843_p10, %p840_p6 }
  0x43   : > { %848 = shalt.err (!%p845_p3)
}
  0x44   : > { %s849_s30 = scalar_lea.vmem %s1157_s8, 256  ;;  %p857_p12 = scmp.lt.s32.totalorder %s1157_s8, %s1157_s8 }
  0x45   : > { %p850_p5 = scmp.ne.s32.totalorder %s1157_s8, %s849_s30  ;;  %p858_p0 = scmp.lt.s32.totalorder %s849_s30, %s849_s30 }
  0x47   : > { %p852_p7 = pnand %p850_p5, %p810_p13  ;;  %p859_p2 = por %p858_p0, %p857_p12 }
  0x49   : > { %p853_p9 = pneg %p852_p7 }
  0x4b   : > { %p860_p1 = pnand %p859_p2, %p853_p9 }
  0x4d   : > { %863 = shalt.err (!%p860_p1)
}
  0x4e   : > { %729 = dma.hbm_to_vmem [thread:$0]  (!%p1153_p11), %s1437_s3, 256, %s1157_s8, [#allocation9], %s1054_s17, %s1054_s17, %s1055_s25  }
  0x4f   : > { %s41_s7 = sadd.s32 1, %s1046_s22  ;;  %s50_s9 = sadd.s32 1, %s1038_s20 }
  0x50   : > { %p43_p13 = scmp.ge.s32.totalorder %s41_s7, 2  ;;  %p57_p6 = scmp.ne.s32.totalorder %s1038_s20, %s1034_s19 }
  0x51   : > { %p58_p10 = scmp.eq.s32.totalorder %s1050_s23, 0  ;;  %p746_p3 = scmp.lt.s32.totalorder %s1050_s23, 2 }
  0x52   : > { %s1457_s7 = smov (%p43_p13, %s41_s7), 0  ;;  %p1439_p7 = scmp.eq.s32.totalorder %s1123_s24, 1 }
  0x53   : > { %1438 = sst [smem:[#allocation20_spill]] %s1457_s7  ;;  %p59_p5 = por %p58_p10, %p57_p6 }
  0x54   : > { %p1221_p9 = por %p1439_p7, %p57_p6  ;;  %s45_s10 = ssub.s32 %s1046_s22, %s1457_s7 }
  0x55   : > { %s239_s11 = sand.u32 1, %s1038_s20   ;;  %p48_p12 = scmp.eq.s32.totalorder %s45_s10, 0 }
  0x56   : > { %s1440_s6 = scalar_select %p1221_p9, 1, 0 }
  0x57   : > { %s1228_s8 = sshll.u32 %s239_s11, 2  ;;  %s663_s17 = sshll.u32 %s1046_s22, 6 }
  0x58   : > { %s1232_s25 = scalar_select %p48_p12, %s1038_s20, %s50_s9  }
  0x59   : > { %s1237_s14 = scalar_lea.hbm %s1417_s0, %s663_s17  ;;  %s243_s15 = scalar_lea.vmem [#allocation2], %s1228_s8 }
  0x5a   : > { %s251_s30 = sshll.u32 %s243_s15, 4  ;;  %p1242_p11 = pnand %p746_p3, %p59_p5  ;;  %s1246_s30 = int_to_ptr.vmem [resolvable:$true] %s251_s30 }
  0x5b   : > { %s1251_s10 = scalar_lea.hbm %s1418_s1, %s663_s17  ;;  %s240_s12 = scalar_lea.sflag [#allocation3], %s239_s11 }
  0x5c   : > { %s864_s13 = scalar_lea.hbm %s1237_s14, 64  ;;  %p866_p2 = pneg %p1242_p11 }
  0x5d   : > { %p865_p0 = scmp.ne.s32.totalorder %s1237_s14, %s864_s13  ;;  %s869_s3 = scalar_lea.hbm %s1417_s0, 128 }
  0x5e   : > { %p870_p6 = scmp.lt.u32.totalorder %s1237_s14, %s1417_s0  ;;  %p871_p10 = scmp.lt.u32.totalorder %s869_s3, %s864_s13 }
  0x5f   : > { %p867_p1 = pnand %p866_p2, %p865_p0  ;;  %p873_p5 = scmp.lt.u32.totalorder %s864_s13, %s1237_s14 }
  0x60   : > { %p872_p3 = por %p871_p10, %p870_p6 }
  0x61   : > { %p868_p13 = pneg %p867_p1 }
  0x62   : > { %p874_p7 = por %p873_p5, %p872_p3 }
  0x64   : > { %p875_p12 = pnand %p874_p7, %p868_p13 }
  0x66   : > { %878 = shalt.err (!%p875_p12)
}
  0x67   : > { %s879_s11 = scalar_lea.vmem %s1246_s30, 64  ;;  %s1056_s2 = smov [#allocation2]  }
  0x68   : > { %p880_p0 = scmp.ne.s32.totalorder %s1246_s30, %s879_s11  ;;  %s884_s17 = sshll.u32 %s1056_s2, 4  ;;  %s885_s17 = int_to_ptr.vmem [resolvable:$false] %s884_s17 }
  0x69   : > { %s886_s22 = scalar_lea.vmem %s885_s17, 128  ;;  %p887_p4 = scmp.lt.s32.totalorder %s1246_s30, %s885_s17 }
  0x6a   : > { %p882_p1 = pnand %p880_p0, %p866_p2  ;;  %p888_p6 = scmp.lt.s32.totalorder %s886_s22, %s879_s11 }
  0x6c   : > { %p883_p9 = pneg %p882_p1  ;;  %p889_p10 = por %p888_p6, %p887_p4 }
  0x6e   : > { %p890_p3 = pnand %p889_p10, %p883_p9 }
  0x70   : > { %893 = shalt.err (!%p890_p3)
}
  0x71   : > { %733 = dma.hbm_to_vmem [thread:$0]  (!%p1242_p11), %s1237_s14, 64, %s1246_s30, %s240_s12  }
  0x72   : > { %s258_s3 = sand.u32 1, %s1050_s23   ;;  %s262_s7 = scalar_lea.vmem [#allocation5], %s1228_s8 }
  0x73   : > { %s270_s29 = sshll.u32 %s262_s7, 4  ;;  %s259_s9 = scalar_lea.sflag [#allocation6], %s258_s3  ;;  %s271_s29 = int_to_ptr.vmem [resolvable:$true] %s270_s29 }
  0x74   : > { %s894_s13 = scalar_lea.hbm %s1251_s10, 64  ;;  %s899_s2 = scalar_lea.hbm %s1418_s1, 128 }
  0x75   : > { %p895_p4 = scmp.ne.s32.totalorder %s1251_s10, %s894_s13  ;;  %p900_p5 = scmp.lt.u32.totalorder %s1251_s10, %s1418_s1 }
  0x76   : > { %p901_p7 = scmp.lt.u32.totalorder %s899_s2, %s894_s13  ;;  %p903_p0 = scmp.lt.u32.totalorder %s894_s13, %s1251_s10 }
  0x77   : > { %p897_p9 = pnand %p895_p4, %p866_p2 }
  0x78   : > { %p902_p12 = por %p901_p7, %p900_p5 }
  0x79   : > { %p898_p13 = pneg %p897_p9 }
  0x7a   : > { %p904_p1 = por %p903_p0, %p902_p12 }
  0x7c   : > { %p905_p6 = pnand %p904_p1, %p898_p13 }
  0x7e   : > { %908 = shalt.err (!%p905_p6)
}
  0x7f   : > { %s909_s8 = scalar_lea.vmem %s271_s29, 64  ;;  %s1057_s14 = smov [#allocation5]  }
  0x80   : > { %p910_p10 = scmp.ne.s32.totalorder %s271_s29, %s909_s8  ;;  %s914_s30 = sshll.u32 %s1057_s14, 4  ;;  %s915_s30 = int_to_ptr.vmem [resolvable:$false] %s914_s30 }
  0x81   : > { %s916_s12 = scalar_lea.vmem %s915_s30, 128  ;;  %p917_p9 = scmp.lt.s32.totalorder %s271_s29, %s915_s30 }
  0x82   : > { %p912_p3 = pnand %p910_p10, %p866_p2  ;;  %p918_p8 = scmp.lt.s32.totalorder %s916_s12, %s909_s8 }
  0x84   : > { %p913_p4 = pneg %p912_p3  ;;  %p919_p5 = por %p918_p8, %p917_p9 }
  0x86   : > { %p920_p7 = pnand %p919_p5, %p913_p4 }
  0x88   : > { %923 = shalt.err (!%p920_p7)
}
  0x89   : > { %736 = dma.hbm_to_vmem [thread:$0]  (!%p1242_p11), %s1251_s10, 64, %s271_s29, %s259_s9  }
  0x8a   : > { %p1442_p13 = scmp.ne.s32.totalorder %s1434_s28, 0 }
  0x8b   : > { %s1302_s3 = sand.u32 (!%p1442_p13), 1, %s1034_s19   ;;  %p1443_p8 = scmp.ne.s32.totalorder (!%p1442_p13), %s1432_s26, 0 }
  0x8c   : > { %279 = sbr.rel (%p1442_p13) target bundleno = 419 (0x1a3), region = 36  ;;  %s1305_s7 = sshll.u32 (!%p1442_p13), %s1302_s3, 2 }
  0x8d   : > { %s282_s13 = scalar_lea.sflag (!%p1442_p13), [#allocation3], %s1302_s3  ;;  %s285_s15 = scalar_lea.vmem (!%p1442_p13), [#allocation2], %s1305_s7 }
  0x93   : > { %1005 = dma.done.wait (%p1443_p8), %s282_s13, 64  }
  0x94   : > { %1007 = vsyncadd (%p1443_p8), %s282_s13, 4294967232  ;;  %s290_s28 = sand.u32 1, %s1123_s24   ;;  %s294_s10 = scalar_lea.vmem [#allocation5], %s1305_s7 }
  0x95   : > { %s291_s16 = scalar_lea.sflag [#allocation6], %s290_s28 }
  0x96   : > { %1009 = dma.done.wait (%p1443_p8), %s291_s16, 64  }
  0x97   : > { %1011 = vsyncadd (%p1443_p8), %s291_s16, 4294967232  ;;  %p1444_p11 = scmp.eq.s32.totalorder %s1123_s24, 0 }
  0x99   : > { %1013 = dma.done.wait (%p1444_p11), [#allocation6], 256   ;;  %p1445_p2 = pmov %p1444_p11 }
  0x9b   : > { %1015 = vsyncadd (%p1445_p2), [#allocation6], 4294967040  ;;  %p1446_p12 = pmov %p1445_p2 }
  0x9c   : > { %p1447_p0 = pmov %p1445_p2 }
  0x9d   : > { %1017 = dma.done.wait (%p1446_p12), [#allocation9], 256  }
  0x9e   : > { %1019 = vsyncadd (%p1447_p0), [#allocation9], 4294967040  ;;  %v1058_v0 = vmov 0.0   ;;  %vm1059_vm0 = vmmov 0   ;;  %v804_v1 = vld [vmem:[#allocation7] sm:$0xff]   ;;  %v805_v2 = vld [vmem:[#allocation8] sm:$0xff]  }
  0x9f   : > { %691 = vmatprep.subr.bf16.mxu0 %v1058_v0  ;;  %699 = vmatprep.subr.bf16.mxu1 %v1058_v0  ;;  %v806_v3 = vld [vmem:[#allocation7 + $0x8] sm:$0xff]   ;;  %v807_v4 = vld [vmem:[#allocation8 + $0x8] sm:$0xff]   ;;  %v340_v5 = vld [vmem:[%s285_s15] sm:$0xf]  ;;  %vm357_vm1 = vcmask 261120   ;;  %s681_s24 = sshll.u32 %s1042_s21, 6 }
  0xa0   : > { %695 = vmatprep.mubr.msk.bf16.mxu0 %vm1059_vm0, %v1058_v0  ;;  %703 = vmatprep.mubr.msk.bf16.mxu1 %vm1059_vm0, %v1058_v0  ;;  %v404_v6 = vld [vmem:[%s294_s10] sm:$0xf]  ;;  %s331_s26 = scalar_lea.vmem [#allocation10], %s1305_s7  ;;  %s338_s9 = scalar_lea.vmem [#allocation11], %s1305_s7  ;;  %vm402_vm2 = vcmask 257024  }
  0xa1   : > { %692 = vmatpush3.bf16.msra.mxu0 %v804_v1  ;;  %700 = vmatpush3.bf16.msra.mxu1 %v805_v2  ;;  %s486_s29 = sshll.u32 %s331_s26, 4  ;;  %s500_s11 = sshll.u32 %s338_s9, 4  ;;  %s1337_s29 = int_to_ptr.vmem [resolvable:$true] %s486_s29  ;;  %s1344_s11 = int_to_ptr.vmem [resolvable:$true] %s500_s11 }
  0xa2   : > { %693 = vmatprep.subr.bf16.mxu0 %v1058_v0  ;;  %701 = vmatprep.subr.bf16.mxu1 %v1058_v0  ;;  %s1335_s22 = scalar_lea.hbm %s1421_s4, %s681_s24  ;;  %s1342_s14 = scalar_lea.hbm %s1422_s5, %s681_s24 }
  0xa3   : > { %s467_s30 = scalar_lea.sflag [#allocation4], %s1302_s3  ;;  %s924_s12 = scalar_lea.vmem %s1337_s29, 64 }
  0xa4   : > { %p925_p1 = scmp.ne.s32.totalorder %s1337_s29, %s924_s12  ;;  %p1448_p6 = scmp.ne.s32.totalorder %s1440_s6, 0 }
  0xa5   : > { %694 = vmatpush3.bf16.msra.mxu0 %v806_v3  ;;  %702 = vmatpush3.bf16.msra.mxu1 %v807_v4  ;;  %s1060_s13 = smov [#allocation10]  }
  0xa6   : > { %p926_p10 = pnand %p925_p1, %p1448_p6  ;;  %s928_s15 = sshll.u32 %s1060_s13, 4  ;;  %s929_s15 = int_to_ptr.vmem [resolvable:$false] %s928_s15 }
  0xa7   : > { %s930_s28 = scalar_lea.vmem %s929_s15, 128  ;;  %p931_p4 = scmp.lt.s32.totalorder %s1337_s29, %s929_s15 }
  0xa8   : > { %696 = vmatmul.mubr.msk.bf16.vlgmr.msra.gmra.mrb[0].mxu0 %vm357_vm1, %v340_v5  ;;  %704 = vmatmul.mubr.msk.bf16.vlgmr.msra.gmra.mrb[0].mxu1 %vm357_vm1, %v404_v6  ;;  %p927_p3 = pneg %p926_p10  ;;  %p932_p9 = scmp.lt.s32.totalorder %s930_s28, %s924_s12 }
  0xaa   : > { %p933_p5 = por %p932_p9, %p931_p4 }
  0xac   : > { %p934_p7 = pnand %p933_p5, %p927_p3 }
 0x17b   : > { %v395_v7 = vpop.f32.mrb[0].mxu0  ;;  %v458_v9 = vpop.f32.mrb[0].mxu1 }
 0x17c   : > { %v401_v8 = vpack.c.bf16 %v395_v7, %v395_v7  ;;  %v697_v10 = vpop.f32.mrb[1].mxu0  ;;  %v464_v11 = vpack.c.bf16 %v458_v9, %v458_v9  ;;  %v705_v12 = vpop.f32.mrb[1].mxu1 }
 0x17d   : > { %v398_v13 = vpop.f32.mrb[2].mxu0  ;;  %v461_v14 = vpop.f32.mrb[2].mxu1 }
 0x17e   : > { %v698_v15 = vpop.f32.mrb[3].mxu0  ;;  %403 = vst.msk [vmem:[%s331_s26] sm:$0xf] %vm402_vm2, %v401_v8  ;;  %v706_v16 = vpop.f32.mrb[3].mxu1 }
 0x17f   : > { %937 = shalt.err (!%p934_p7)
}
 0x180   : > { %s938_s16 = scalar_lea.hbm %s1335_s22, 64  ;;  %s942_s26 = scalar_lea.hbm %s1421_s4, 128 }
 0x181   : > { %p939_p13 = scmp.ne.s32.totalorder %s1335_s22, %s938_s16  ;;  %p943_p2 = scmp.lt.u32.totalorder %s1335_s22, %s1421_s4 }
 0x182   : > { %p944_p12 = scmp.lt.u32.totalorder %s942_s26, %s938_s16  ;;  %p946_p1 = scmp.lt.u32.totalorder %s938_s16, %s1335_s22 }
 0x183   : > { %p940_p8 = pnand %p939_p13, %p1448_p6 }
 0x184   : > { %p945_p0 = por %p944_p12, %p943_p2 }
 0x185   : > { %p941_p11 = pneg %p940_p8 }
 0x186   : > { %p947_p10 = por %p946_p1, %p945_p0 }
 0x188   : > { %p948_p3 = pnand %p947_p10, %p941_p11 }
 0x18a   : > { %951 = shalt.err (!%p948_p3)
}
 0x18b   : > { %719 = dma.vmem_to_hbm [thread:$0]  (%p1448_p6), %s1337_s29, 64, %s1335_s22, %s467_s30   ;;  %465 = vst.msk [vmem:[%s338_s9] sm:$0xf] %vm402_vm2, %v464_v11 }
 0x18c   : > { %s472_s21 = scalar_lea.sflag [#allocation12], %s1302_s3  ;;  %s952_s8 = scalar_lea.vmem %s1344_s11, 64 }
 0x18d   : > { %p953_p4 = scmp.ne.s32.totalorder %s1344_s11, %s952_s8  ;;  %s1061_s12 = smov [#allocation11]  }
 0x18e   : > { %s956_s13 = sshll.u32 %s1061_s12, 4  ;;  %s957_s13 = int_to_ptr.vmem [resolvable:$false] %s956_s13 }
 0x18f   : > { %p954_p9 = pnand %p953_p4, %p1448_p6  ;;  %s958_s15 = scalar_lea.vmem %s957_s13, 128 }
 0x190   : > { %p959_p7 = scmp.lt.s32.totalorder %s1344_s11, %s957_s13  ;;  %p960_p13 = scmp.lt.s32.totalorder %s958_s15, %s952_s8 }
 0x191   : > { %p955_p5 = pneg %p954_p9 }
 0x192   : > { %p961_p8 = por %p960_p13, %p959_p7 }
 0x194   : > { %p962_p11 = pnand %p961_p8, %p955_p5 }
 0x196   : > { %965 = shalt.err (!%p962_p11)
}
 0x197   : > { %s966_s3 = scalar_lea.hbm %s1342_s14, 64  ;;  %s970_s9 = scalar_lea.hbm %s1422_s5, 128 }
 0x198   : > { %p967_p2 = scmp.ne.s32.totalorder %s1342_s14, %s966_s3  ;;  %p971_p1 = scmp.lt.u32.totalorder %s1342_s14, %s1422_s5 }
 0x199   : > { %p972_p10 = scmp.lt.u32.totalorder %s970_s9, %s966_s3  ;;  %p974_p4 = scmp.lt.u32.totalorder %s966_s3, %s1342_s14 }
 0x19a   : > { %p968_p12 = pnand %p967_p2, %p1448_p6 }
 0x19b   : > { %p973_p3 = por %p972_p10, %p971_p1 }
 0x19c   : > { %p969_p0 = pneg %p968_p12 }
 0x19d   : > { %p975_p9 = por %p974_p4, %p973_p3 }
 0x19f   : > { %p976_p5 = pnand %p975_p9, %p969_p0 }
 0x1a1   : > { %979 = shalt.err (!%p976_p5)
}
 0x1a2   : > { %720 = dma.vmem_to_hbm [thread:$0]  (%p1448_p6), %s1344_s11, 64, %s1342_s14, %s472_s21  }
 0x1a3 PF: > { %s512_s28 = sand.u32 1, %s1030_s18   ;;  %p1449_p7 = scmp.ne.s32.totalorder %s1433_s27, 0 }
 0x1a4   : > { %p1450_p13 = scmp.ge.s32.totalorder %s1050_s23, 2  ;;  %s513_s16 = scalar_lea.sflag [#allocation4], %s512_s28 }
 0x1a6   : > { %p738_p8 = pnand %p1450_p13, %p1449_p7 }
 0x1a8   : > { %1021 = dma.done.wait (!%p738_p8), %s513_s16, 64  }
 0x1a9   : > { %1023 = vsyncadd (!%p738_p8), %s513_s16, 4294967232  ;;  %s522_s10 = scalar_lea.sflag [#allocation12], %s512_s28 }
 0x1aa   : > { %1025 = dma.done.wait (!%p738_p8), %s522_s10, 64  }
 0x1ab   : > { %1027 = vsyncadd (!%p738_p8), %s522_s10, 4294967232  ;;  %s29_s23 = sadd.s32 1, %s1050_s23   ;;  %s1451_s21 = sld [smem:[#allocation19_spill]] }
 0x1ac   : > { %p26_p11 = scmp.ge.s32.totalorder %s29_s23, 4   ;;  %s1452_s22 = sld [smem:[#allocation20_spill]] }
 0x1ad   : > { %s1453_s18 = smov %s1034_s19  ;;  %s1454_s19 = smov %s1038_s20 }
 0x1ae   : > { %s1455_s20 = smov %s1232_s25  ;;  %28 = sbr.rel (!%p26_p11) target bundleno = 14 (0xe), region = 119 }
 0x1b5   :  { %527 = vsyncpa [#allocation3], 1 }
 0x1b6   :  { %529 = vsyncpa [#allocation3 + $0x1], 1 }
 0x1b7   :  { %530 = vsyncpa [#allocation6], 1 }
 0x1b8   :  { %532 = vsyncpa [#allocation6 + $0x1], 1 }
 0x1b9   :  { %533 = vsyncpa [#allocation9], 1 }
 0x1ba   :  { %534 = vsyncpa [#allocation4], 1 }
 0x1bb   :  { %536 = vsyncpa [#allocation4 + $0x1], 1 }
 0x1bc   :  { %537 = vsyncpa [#allocation12], 1 }
 0x1bd   :  { %539 = vsyncpa [#allocation12 + $0x1], 1 }

</bundles_post_ra>
